<compile_context>
chip_gen: v5e
topology: v5e:2x2
jax: 0.10.0
libtpu: 0.0.40
codegen_flags: <defaults>
</compile_context>

<pallas_src>
import functools

import jax
import jax.numpy as jnp
from jax.experimental import pallas as pl
from jax.experimental.pallas import tpu as pltpu


def _round_up(x, m):
    return ((x + m - 1) // m) * m


# ----------------------------------------------------------------------------
# Fused stacked-GRUCell kernel.  Grid axis = layer index (sequential).
# Ref shapes seen by the kernel (leading layer dim squeezed by BlockSpec):
#   x_ref     : (Bp, Kp)      bf16  padded input (read only at layer 0)
#   h_ref     : (Bp, Hs)      f32   padded previous state of this layer
#   w_ref     : (Kp, 2*C3)    int8  [W_ih^T | W_hh^T], gates r|z|n contiguous
#   sb_ref    : (2, 2*C3)     f32   row 0 = per-column scales, row 1 = biases
#                                   bias layout: [b_ir+b_hr|b_iz+b_hz|b_in|0]
#                                                [   0     |    0    |b_hn|0]
#   out_ref   : (Bp, Hs)      f32   new state of this layer
#   carry_ref : (Bp, Kp)      bf16  VMEM scratch carrying the layer input
# ----------------------------------------------------------------------------
def _gru_stack_kernel(x_ref, h_ref, w_ref, sb_ref, out_ref, carry_ref, *,
                      hidden):
    layer = pl.program_id(0)

    # Layer 0 consumes the external input; deeper layers consume the carry
    # (previous layer's output), which never leaves VMEM.
    @pl.when(layer == 0)
    def _():
        carry_ref[...] = x_ref[...]

    bp, kp = carry_ref.shape
    c3 = w_ref.shape[-1] // 2
    hs = out_ref.shape[-1]
    h_dim = hidden

    x_in = carry_ref[...]                                     # (Bp, Kp) bf16

    # Merged int8 weight slab -> bf16 for the MXU; dequant scale is applied
    # AFTER the matmul as a tiny (Bp, C3) column multiply.
    w_ih = w_ref[:, 0:c3].astype(jnp.float32).astype(jnp.bfloat16)
    w_hh = w_ref[:, c3:2 * c3].astype(jnp.float32).astype(jnp.bfloat16)
    scale_i = sb_ref[0:1, 0:c3]
    scale_h = sb_ref[0:1, c3:2 * c3]
    bias_i = sb_ref[1:2, 0:c3]
    bias_h = sb_ref[1:2, c3:2 * c3]

    gi = jnp.dot(x_in, w_ih,
                 preferred_element_type=jnp.float32) * scale_i + bias_i

    # Hidden-path matmul input: first Kp state lanes (zeros beyond H, and the
    # W_hh rows beyond H are zero too, so padding is inert).
    hk = min(kp, hs)
    h_k = h_ref[:, 0:hk]                                      # (Bp, hk) f32
    h_mat = h_k.astype(jnp.bfloat16)
    if kp > hk:
        h_mat = jnp.concatenate(
            [h_mat, jnp.zeros((bp, kp - hk), jnp.bfloat16)], axis=-1)
    gh = jnp.dot(h_mat, w_hh,
                 preferred_element_type=jnp.float32) * scale_h + bias_h

    # PyTorch GRUCell gate math (gate order r, z, n).  r/z biases are fused on
    # the gi side; b_hn sits in gh's n block so it stays inside r * (...).
    r = jax.nn.sigmoid(gi[:, 0:h_dim] + gh[:, 0:h_dim])
    z = jax.nn.sigmoid(gi[:, h_dim:2 * h_dim] + gh[:, h_dim:2 * h_dim])
    n = jnp.tanh(gi[:, 2 * h_dim:3 * h_dim] + r * gh[:, 2 * h_dim:3 * h_dim])
    h_new = (1.0 - z) * n + z * h_k[:, 0:h_dim]

    # Full-width stores: keep padded lanes at exactly zero so the aliased
    # state / the carry never feed garbage into the next matmul.
    if hs > h_dim:
        h_store = jnp.concatenate(
            [h_new, jnp.zeros((bp, hs - h_dim), jnp.float32)], axis=-1)
    else:
        h_store = h_new
    out_ref[...] = h_store

    if kp > h_dim:
        carry_val = jnp.concatenate(
            [h_new, jnp.zeros((bp, kp - h_dim), jnp.float32)], axis=-1)
    else:
        carry_val = h_new
    carry_ref[...] = carry_val.astype(jnp.bfloat16)


# ----------------------------------------------------------------------------
# Wrapper: one decoder step.  State stays in the padded (L, Bp, Hs) layout
# across tokens and is aliased to the output (and donated), so no per-token
# state copies/transposes.
# ----------------------------------------------------------------------------
@functools.partial(jax.jit, static_argnames=("hidden",), donate_argnums=(2,))
def decoder_rnn_step(packed, x, state_pad, *, hidden):
    L, Bp, Hs = state_pad.shape
    _, Kp, twoC3 = packed["w_q"].shape
    B, in_size = x.shape

    # Only x needs padding per token.
    x_pad = jnp.zeros((Bp, Kp), jnp.bfloat16)
    x_pad = x_pad.at[:B, :in_size].set(x.astype(jnp.bfloat16))

    kernel = functools.partial(_gru_stack_kernel, hidden=hidden)

    # Rough VMEM estimate: double-buffered per-layer slabs + state + carry.
    vmem_est = (2 * (Kp * twoC3            # int8 weight slab (x2 buffers)
                     + 2 * twoC3 * 4       # scale+bias slab
                     + Bp * Hs * 4)        # state in block
                + 2 * Bp * Hs * 4          # state out block (x2 buffers)
                + 2 * Bp * Kp * 2          # x block
                + Bp * Kp * 2)             # carry scratch
    if vmem_est > 24 * 1024 * 1024:
        # TODO(synk): for very large H on v7x (64 MiB VMEM), add a second grid
        # axis tiling the gate columns instead of just raising the limit.
        compiler_params = pltpu.CompilerParams(
            dimension_semantics=("arbitrary",),
            vmem_limit_bytes=min(2 * vmem_est, 64 * 1024 * 1024))
    else:
        compiler_params = pltpu.CompilerParams(
            dimension_semantics=("arbitrary",))

    return pl.pallas_call(
        kernel,
        out_shape=jax.ShapeDtypeStruct((L, Bp, Hs), jnp.float32),
        grid_spec=pltpu.PrefetchScalarGridSpec(
            num_scalar_prefetch=0,
            grid=(L,),
            in_specs=[
                # external input (same block every layer; only read at layer 0)
                pl.BlockSpec((Bp, Kp), lambda l: (0, 0)),
                # per-layer previous state
                pl.BlockSpec((None, Bp, Hs), lambda l: (l, 0, 0)),
                # merged per-layer weights (int8)
                pl.BlockSpec((None, Kp, twoC3), lambda l: (l, 0, 0)),
                # merged per-layer scales + biases
                pl.BlockSpec((None, 2, twoC3), lambda l: (l, 0, 0)),
            ],
            out_specs=pl.BlockSpec((None, Bp, Hs), lambda l: (l, 0, 0)),
            scratch_shapes=[pltpu.VMEM((Bp, Kp), jnp.bfloat16)],
        ),
        # state in == state out: no separate output allocation / writeback.
        input_output_aliases={1: 0},
        compiler_params=compiler_params,
    )(x_pad, state_pad, packed["w_q"], packed["sb"])


# ----------------------------------------------------------------------------
# Parameter construction / packing
# ----------------------------------------------------------------------------
def init_decoder_params(key, num_layers, hidden, input_size):
    """PyTorch-GRUCell-style params: U(-1/sqrt(H), 1/sqrt(H))."""
    params = []
    bound = 1.0 / (hidden ** 0.5)
    for layer_idx in range(num_layers):
        in_sz = input_size if layer_idx == 0 else hidden
        key, k1, k2, k3, k4 = jax.random.split(key, 5)
        params.append({
            "w_ih": jax.random.uniform(k1, (3 * hidden, in_sz), jnp.float32, -bound, bound),
            "w_hh": jax.random.uniform(k2, (3 * hidden, hidden), jnp.float32, -bound, bound),
            "b_ih": jax.random.uniform(k3, (3 * hidden,), jnp.float32, -bound, bound),
            "b_hh": jax.random.uniform(k4, (3 * hidden,), jnp.float32, -bound, bound),
        })
    return params


def _quantize_rows_int8(w):
    """Per-output-channel (per-row) symmetric int8 quantization."""
    absmax = jnp.max(jnp.abs(w), axis=1)
    scale = jnp.where(absmax > 0, absmax / 127.0, 1.0)
    q = jnp.clip(jnp.round(w / scale[:, None]), -127.0, 127.0).astype(jnp.int8)
    return q, scale


def _fake_quant_rows_int8(w):
    q, scale = _quantize_rows_int8(w)
    return q.astype(jnp.float32) * scale[:, None]


def pack_decoder_params(layer_params, input_size, hidden):
    """Pack per-layer params into two arrays per layer-step DMA:

    w_q : (L, Kp, 2*C3) int8   [W_ih^T | W_hh^T], gates r|z|n contiguous,
                               rows padded only to 16, 3H padded once to 128.
    sb  : (L, 2, 2*C3)  f32    row 0 = per-column dequant scales,
                               row 1 = biases ([b_ir+b_hr|b_iz+b_hz|b_in|0]
                                               [   0     |    0    |b_hn|0]).
    """
    L = len(layer_params)
    H = hidden
    C3 = _round_up(3 * H, 128)
    Kp = _round_up(max(input_size, H), 16)

    w_q = jnp.zeros((L, Kp, 2 * C3), jnp.int8)
    sb = jnp.zeros((L, 2, 2 * C3), jnp.float32)
    sb = sb.at[:, 0, :].set(1.0)   # benign scale for zero-padded columns

    for li, p in enumerate(layer_params):
        in_sz = input_size if li == 0 else H
        for w, col0, rows in ((p["w_ih"], 0, in_sz), (p["w_hh"], C3, H)):
            q, scale = _quantize_rows_int8(w)            # (3H, rows), (3H,)
            w_q = w_q.at[li, :rows, col0:col0 + 3 * H].set(q.T)
            sb = sb.at[li, 0, col0:col0 + 3 * H].set(scale)
        bi, bh = p["b_ih"], p["b_hh"]
        b_i = jnp.concatenate([bi[:2 * H] + bh[:2 * H], bi[2 * H:]])
        sb = sb.at[li, 1, 0:3 * H].set(b_i)
        sb = sb.at[li, 1, C3 + 2 * H:C3 + 3 * H].set(bh[2 * H:])

    return {"w_q": w_q, "sb": sb}


def pack_decoder_state(previous_state):
    """(B, L, H) -> persistent padded kernel layout (L, Bp, Hs)."""
    B, L, H = previous_state.shape
    Bp = max(8, _round_up(B, 8))
    Hs = _round_up(H, 128)
    st = jnp.zeros((L, Bp, Hs), jnp.float32)
    return st.at[:, :B, :H].set(jnp.transpose(previous_state, (1, 0, 2)))


def unpack_decoder_state(state_pad, batch, hidden):
    """(L, Bp, Hs) -> (B, L, H) (validation / joiner consumption only)."""
    return jnp.transpose(state_pad[:, :batch, :hidden], (1, 0, 2))


# ----------------------------------------------------------------------------
# Pure-JAX reference: PyTorch GRUCell math, f32 activations, the SAME
# int8-dequantized weights as the kernel (so quant error cancels).
# ----------------------------------------------------------------------------
def decoder_rnn_reference(layer_params, x, previous_state):
    layer_in = x
    states = []
    for li, p in enumerate(layer_params):
        h = previous_state[:, li, :]
        H = h.shape[-1]
        wi = _fake_quant_rows_int8(p["w_ih"])
        wh = _fake_quant_rows_int8(p["w_hh"])
        gi = layer_in @ wi.T + p["b_ih"]
        gh = h @ wh.T + p["b_hh"]
        r = jax.nn.sigmoid(gi[:, :H] + gh[:, :H])
        z = jax.nn.sigmoid(gi[:, H:2 * H] + gh[:, H:2 * H])
        n = jnp.tanh(gi[:, 2 * H:] + r * gh[:, 2 * H:])
        h_new = (1.0 - z) * n + z * h
        states.append(h_new)
        layer_in = h_new  # Dropout == identity in inference mode
    return jnp.stack(states, axis=1)


if __name__ == "__main__":
    batch = 2
    input_size = 16
    num_decoder_hidden = 32
    num_decoder_layers = 3
    dropout = 0.1  # identity at inference -> no-op
    num_steps = 2  # exercise the persistent-state / aliasing decode loop

    key = jax.random.PRNGKey(0)
    key, k_par, k_x, k_h = jax.random.split(key, 4)

    layer_params = init_decoder_params(
        k_par, num_decoder_layers, num_decoder_hidden, input_size)
    packed = pack_decoder_params(layer_params, input_size, num_decoder_hidden)

    xs = jax.random.normal(k_x, (num_steps, batch, input_size), jnp.float32)
    previous_state = jax.random.normal(
        k_h, (batch, num_decoder_layers, num_decoder_hidden), jnp.float32)

    # Kernel path: state stays in the padded kernel layout between tokens.
    state_pad = pack_decoder_state(previous_state)
    for t in range(num_steps):
        state_pad = decoder_rnn_step(packed, xs[t], state_pad,
                                     hidden=num_decoder_hidden)
    state_pad = jax.block_until_ready(state_pad)
    out = unpack_decoder_state(state_pad, batch, num_decoder_hidden)

    # Reference path.
    ref_state = previous_state
    for t in range(num_steps):
        ref_state = decoder_rnn_reference(layer_params, xs[t], ref_state)

    assert out.shape == (batch, num_decoder_layers, num_decoder_hidden), out.shape
    # Weights are identically int8-dequantized in both paths; the kernel
    # additionally runs the matmuls with bf16 activations, hence the tolerance.
    max_err = float(jnp.max(jnp.abs(out - ref_state)))
    assert jnp.allclose(out, ref_state, atol=3e-2, rtol=3e-2), (
        f"Pallas output mismatch: max abs err = {max_err}")

    print("KERNEL_OK")
</pallas_src>

<mosaic_0001>
module attributes {stable_mosaic.version = 11 : i64} {
  func.func @_gru_stack_kernel(%arg0: i32, %arg1: memref<8x32xbf16, #tpu.memory_space<vmem>>, %arg2: memref<1x8x128xf32, #tpu.memory_space<vmem>>, %arg3: memref<1x32x256xi8, #tpu.memory_space<vmem>>, %arg4: memref<1x2x256xf32, #tpu.memory_space<vmem>>, %arg5: memref<1x8x128xf32, #tpu.memory_space<vmem>>, %arg6: memref<8x32xbf16, #tpu.memory_space<vmem>>) attributes {dimension_semantics = [#tpu.dimension_semantics<arbitrary>], iteration_bounds = array<i64: 3>, scalar_prefetch = 0 : i64, scratch_operands = 1 : i64, tpu.core_type = #tpu.core_type<tc>, window_params = [{pipeline_mode = #tpu.pipeline_mode<synchronous>, transform_indices = @transform_0, window_bounds = array<i64: 8, 32>}, {transform_indices = @transform_1, window_bounds = array<i64: 1, 8, 128>}, {transform_indices = @transform_2, window_bounds = array<i64: 1, 32, 256>}, {transform_indices = @transform_3, window_bounds = array<i64: 1, 2, 256>}, {transform_indices = @transform_4, window_bounds = array<i64: 1, 8, 128>}]} {
    %c0_i32 = arith.constant 0 : i32
    %0 = arith.cmpi eq, %arg0, %c0_i32 : i32
    %1 = arith.extui %0 : i1 to i32
    %c0_i32_0 = arith.constant 0 : i32
    %2 = arith.cmpi ne, %1, %c0_i32_0 : i32
    scf.if %2 {
      %c0_31 = arith.constant 0 : index
      %c0_32 = arith.constant 0 : index
      %66 = vector.load %arg1[%c0_31, %c0_32] : memref<8x32xbf16, #tpu.memory_space<vmem>>, vector<8x32xbf16>
      %c0_33 = arith.constant 0 : index
      %c0_34 = arith.constant 0 : index
      %67 = vector.load %arg6[%c0_33, %c0_34] : memref<8x32xbf16, #tpu.memory_space<vmem>>, vector<8x32xbf16>
      tpu.vector_store %arg6[%c0_33, %c0_34], %66 {strides = array<i32>} : memref<8x32xbf16, #tpu.memory_space<vmem>>, vector<8x32xbf16>,
    } else {
    }
    %c0 = arith.constant 0 : index
    %c0_1 = arith.constant 0 : index
    %3 = vector.load %arg6[%c0, %c0_1] : memref<8x32xbf16, #tpu.memory_space<vmem>>, vector<8x32xbf16>
    %c0_2 = arith.constant 0 : index
    %c0_3 = arith.constant 0 : index
    %c0_4 = arith.constant 0 : index
    %4 = vector.load %arg3[%c0_2, %c0_3, %c0_4] : memref<1x32x256xi8, #tpu.memory_space<vmem>>, vector<1x32x128xi8>
    %5 = vector.shape_cast %4 : vector<1x32x128xi8> to vector<32x128xi8>
    %6 = arith.sitofp %5 : vector<32x128xi8> to vector<32x128xf32>
    %7 = arith.truncf %6 : vector<32x128xf32> to vector<32x128xbf16>
    %c0_5 = arith.constant 0 : index
    %c0_6 = arith.constant 0 : index
    %c128 = arith.constant 128 : index
    %8 = vector.load %arg3[%c0_5, %c0_6, %c128] : memref<1x32x256xi8, #tpu.memory_space<vmem>>, vector<1x32x128xi8>
    %9 = vector.shape_cast %8 : vector<1x32x128xi8> to vector<32x128xi8>
    %10 = arith.sitofp %9 : vector<32x128xi8> to vector<32x128xf32>
    %11 = arith.truncf %10 : vector<32x128xf32> to vector<32x128xbf16>
    %c0_7 = arith.constant 0 : index
    %c0_8 = arith.constant 0 : index
    %c0_9 = arith.constant 0 : index
    %12 = vector.load %arg4[%c0_7, %c0_8, %c0_9] : memref<1x2x256xf32, #tpu.memory_space<vmem>>, vector<1x1x128xf32>
    %13 = vector.shape_cast %12 : vector<1x1x128xf32> to vector<1x128xf32>
    %c0_10 = arith.constant 0 : index
    %c0_11 = arith.constant 0 : index
    %c128_12 = arith.constant 128 : index
    %14 = vector.load %arg4[%c0_10, %c0_11, %c128_12] : memref<1x2x256xf32, #tpu.memory_space<vmem>>, vector<1x1x128xf32>
    %15 = vector.shape_cast %14 : vector<1x1x128xf32> to vector<1x128xf32>
    %c0_13 = arith.constant 0 : index
    %c1 = arith.constant 1 : index
    %c0_14 = arith.constant 0 : index
    %16 = vector.load %arg4[%c0_13, %c1, %c0_14] : memref<1x2x256xf32, #tpu.memory_space<vmem>>, vector<1x1x128xf32>
    %17 = vector.shape_cast %16 : vector<1x1x128xf32> to vector<1x128xf32>
    %c0_15 = arith.constant 0 : index
    %c1_16 = arith.constant 1 : index
    %c128_17 = arith.constant 128 : index
    %18 = vector.load %arg4[%c0_15, %c1_16, %c128_17] : memref<1x2x256xf32, #tpu.memory_space<vmem>>, vector<1x1x128xf32>
    %19 = vector.shape_cast %18 : vector<1x1x128xf32> to vector<1x128xf32>
    %cst = arith.constant dense<0.000000e+00> : vector<8x128xf32>
    %20 = tpu.matmul %3, %7, %cst {dimension_numbers = #tpu.dot_dimension_numbers<[1], [0], [0], [1], [0, 0, 1, 1], [], []>} : vector<8x32xbf16>, vector<32x128xbf16>, vector<8x128xf32> -> vector<8x128xf32>
    %21 = vector.broadcast %13 : vector<1x128xf32> to vector<8x128xf32>
    %22 = arith.mulf %20, %21 : vector<8x128xf32>
    %23 = vector.broadcast %17 : vector<1x128xf32> to vector<8x128xf32>
    %24 = arith.addf %22, %23 : vector<8x128xf32>
    %c0_18 = arith.constant 0 : index
    %c0_19 = arith.constant 0 : index
    %c0_20 = arith.constant 0 : index
    %25 = vector.load %arg2[%c0_18, %c0_19, %c0_20] : memref<1x8x128xf32, #tpu.memory_space<vmem>>, vector<1x8x32xf32>
    %26 = vector.shape_cast %25 : vector<1x8x32xf32> to vector<8x32xf32>
    %27 = arith.truncf %26 : vector<8x32xf32> to vector<8x32xbf16>
    %cst_21 = arith.constant dense<0.000000e+00> : vector<8x128xf32>
    %28 = tpu.matmul %27, %11, %cst_21 {dimension_numbers = #tpu.dot_dimension_numbers<[1], [0], [0], [1], [0, 0, 1, 1], [], []>} : vector<8x32xbf16>, vector<32x128xbf16>, vector<8x128xf32> -> vector<8x128xf32>
    %29 = vector.broadcast %15 : vector<1x128xf32> to vector<8x128xf32>
    %30 = arith.mulf %28, %29 : vector<8x128xf32>
    %31 = vector.broadcast %19 : vector<1x128xf32> to vector<8x128xf32>
    %32 = arith.addf %30, %31 : vector<8x128xf32>
    %33 = vector.extract_strided_slice %24 {offsets = [0, 0], sizes = [8, 32], strides = [1, 1]} : vector<8x128xf32> to vector<8x32xf32>
    %34 = vector.extract_strided_slice %32 {offsets = [0, 0], sizes = [8, 32], strides = [1, 1]} : vector<8x128xf32> to vector<8x32xf32>
    %35 = arith.addf %33, %34 : vector<8x32xf32>
    %36 = arith.negf %35 : vector<8x32xf32>
    %37 = math.exp %36 : vector<8x32xf32>
    %cst_22 = arith.constant 1.000000e+00 : f32
    %38 = vector.broadcast %cst_22 : f32 to vector<8x32xf32>
    %39 = arith.addf %38, %37 : vector<8x32xf32>
    %40 = arith.divf %38, %39 : vector<8x32xf32>
    %41 = vector.extract_strided_slice %24 {offsets = [0, 32], sizes = [8, 32], strides = [1, 1]} : vector<8x128xf32> to vector<8x32xf32>
    %42 = vector.extract_strided_slice %32 {offsets = [0, 32], sizes = [8, 32], strides = [1, 1]} : vector<8x128xf32> to vector<8x32xf32>
    %43 = arith.addf %41, %42 : vector<8x32xf32>
    %44 = arith.negf %43 : vector<8x32xf32>
    %45 = math.exp %44 : vector<8x32xf32>
    %cst_23 = arith.constant 1.000000e+00 : f32
    %46 = vector.broadcast %cst_23 : f32 to vector<8x32xf32>
    %47 = arith.addf %46, %45 : vector<8x32xf32>
    %48 = arith.divf %46, %47 : vector<8x32xf32>
    %49 = vector.extract_strided_slice %24 {offsets = [0, 64], sizes = [8, 32], strides = [1, 1]} : vector<8x128xf32> to vector<8x32xf32>
    %50 = vector.extract_strided_slice %32 {offsets = [0, 64], sizes = [8, 32], strides = [1, 1]} : vector<8x128xf32> to vector<8x32xf32>
    %51 = arith.mulf %40, %50 : vector<8x32xf32>
    %52 = arith.addf %49, %51 : vector<8x32xf32>
    %53 = math.tanh %52 : vector<8x32xf32>
    %cst_24 = arith.constant 1.000000e+00 : f32
    %54 = vector.broadcast %cst_24 : f32 to vector<8x32xf32>
    %55 = arith.subf %54, %48 : vector<8x32xf32>
    %56 = arith.mulf %55, %53 : vector<8x32xf32>
    %57 = arith.mulf %48, %26 : vector<8x32xf32>
    %58 = arith.addf %56, %57 : vector<8x32xf32>
    %cst_25 = arith.constant 0.000000e+00 : f32
    %59 = vector.broadcast %cst_25 : f32 to vector<8x96xf32>
    %60 = tpu.concatenate %58, %59 in 1 : vector<8x32xf32>, vector<8x96xf32> -> vector<8x128xf32>
    %c0_26 = arith.constant 0 : index
    %c0_27 = arith.constant 0 : index
    %c0_28 = arith.constant 0 : index
    %61 = vector.load %arg5[%c0_26, %c0_27, %c0_28] : memref<1x8x128xf32, #tpu.memory_space<vmem>>, vector<1x8x128xf32>
    %62 = vector.shape_cast %61 : vector<1x8x128xf32> to vector<8x128xf32>
    %63 = vector.shape_cast %60 : vector<8x128xf32> to vector<1x8x128xf32>
    tpu.vector_store %arg5[%c0_26, %c0_27, %c0_28], %63 {strides = array<i32>} : memref<1x8x128xf32, #tpu.memory_space<vmem>>, vector<1x8x128xf32>,
    %64 = arith.truncf %58 : vector<8x32xf32> to vector<8x32xbf16>
    %c0_29 = arith.constant 0 : index
    %c0_30 = arith.constant 0 : index
    %65 = vector.load %arg6[%c0_29, %c0_30] : memref<8x32xbf16, #tpu.memory_space<vmem>>, vector<8x32xbf16>
    tpu.vector_store %arg6[%c0_29, %c0_30], %64 {strides = array<i32>} : memref<8x32xbf16, #tpu.memory_space<vmem>>, vector<8x32xbf16>,
    return
  }
  func.func @transform_0(%arg0: i32) -> (i32, i32) {
    %c0_i32 = arith.constant 0 : i32
    %c0_i32_0 = arith.constant 0 : i32
    %c0_i32_1 = arith.constant 0 : i32
    return %c0_i32, %c0_i32_0 : i32, i32
  }
  func.func @transform_1(%arg0: i32) -> (i32, i32, i32) {
    %c0_i32 = arith.constant 0 : i32
    %c0_i32_0 = arith.constant 0 : i32
    %c0_i32_1 = arith.constant 0 : i32
    return %arg0, %c0_i32, %c0_i32_0 : i32, i32, i32
  }
  func.func @transform_2(%arg0: i32) -> (i32, i32, i32) {
    %c0_i32 = arith.constant 0 : i32
    %c0_i32_0 = arith.constant 0 : i32
    %c0_i32_1 = arith.constant 0 : i32
    return %arg0, %c0_i32, %c0_i32_0 : i32, i32, i32
  }
  func.func @transform_3(%arg0: i32) -> (i32, i32, i32) {
    %c0_i32 = arith.constant 0 : i32
    %c0_i32_0 = arith.constant 0 : i32
    %c0_i32_1 = arith.constant 0 : i32
    return %arg0, %c0_i32, %c0_i32_0 : i32, i32, i32
  }
  func.func @transform_4(%arg0: i32) -> (i32, i32, i32) {
    %c0_i32 = arith.constant 0 : i32
    %c0_i32_0 = arith.constant 0 : i32
    %c0_i32_1 = arith.constant 0 : i32
    return %arg0, %c0_i32, %c0_i32_0 : i32, i32, i32
  }
}

</mosaic_0001>

<bundles_post_ra>
// kernel: decoder_rnn_step.1
= control target key start
LH: loop header
LB: loop body
LE: loop exit
PB: predicated region body
PF: predicated region fallthrough
CT: control target
= control target key end

     0   :  { %s1034_s0 = inlined_call_operand.vmem [shape: bf16[8,32], index: 0, kind: input, shape index: {}]   ;;  %s1035_s1 = inlined_call_operand.hbm [shape: f32[3,8,128], index: 1, kind: input, shape index: {}, may-alias: {1,4}]   ;;  %s1036_s2 = inlined_call_operand.hbm [shape: s8[3,32,256], index: 2, kind: input, shape index: {}]   ;;  %s1037_s3 = inlined_call_operand.hbm [shape: f32[3,2,256], index: 3, kind: input, shape index: {}]   ;;  %s1038_s4 = inlined_call_operand.hbm [shape: f32[3,8,128], index: 4, kind: output, shape index: {}, may-alias: {1,4}]  }
   0x1   :  { %1040 = sst [smem:[#allocation15_spill]] %s1036_s2 }
   0x2   :  { %9 = vsyncpa [#allocation4], 0 }
   0x3   :  { %11 = vsyncpa [#allocation4 + $0x1], 0 }
   0x4   :  { %12 = vsyncpa [#allocation7], 0 }
   0x5   :  { %14 = vsyncpa [#allocation7 + $0x1], 0 }
   0x6   :  { %15 = vsyncpa [#allocation5], 0 }
   0x7   :  { %17 = vsyncpa [#allocation5 + $0x1], 0  ;;  %s840_s15 = smov 0   ;;  %s842_s16 = smov 0  }
   0x8   :  { %s844_s17 = smov 0   ;;  %s846_s18 = smov 0  }
   0x9 LB: > { %1041 = sst [smem:[#allocation13_spill]] %s806_s17  ;;  %s861_s19 = sadd.s32 4294967295, %s810_s18   ;;  %s810_s18 = sphi %s846_s18, %s1053_s18   ;;  %s806_s17 = sphi %s844_s17, %s1050_s17   ;;  %s802_s16 = sphi %s842_s16, %s1052_s16   ;;  %s798_s15 = sphi %s840_s15, %s1051_s15  }
   0xa   : > { %s555_s20 = sadd.s32 4294967294, %s810_s18   ;;  %s865_s21 = sadd.s32 1, %s810_s18  }
   0xb   : > { %s51_s22 = sadd.s32 1, %s806_s17  ;;  %s48_s23 = ssub.s32 %s810_s18, %s865_s21 }
   0xc   : > { %p58_p0 = scmp.ne.s32.totalorder %s806_s17, %s802_s16  ;;  %p49_p1 = scmp.eq.s32.totalorder %s48_s23, 0 }
   0xd   : > { %p59_p2 = scmp.eq.s32.totalorder %s810_s18, 0  ;;  %p64_p3 = scmp.ne.s32.totalorder %s802_s16, %s798_s15 }
   0xe   : > { %p65_p4 = scmp.eq.s32.totalorder %s861_s19, 0  ;;  %p140_p7 = scmp.eq.s32.totalorder %s861_s19, 2 }
   0xf   : > { %s877_s24 = scalar_select %p49_p1, %s806_s17, %s51_s22  }
  0x10   : > { %p60_p5 = por %p59_p2, %p58_p0  ;;  %p879_p6 = por %p65_p4, %p64_p3 }
  0x11   : > { %1042 = sst [smem:[#allocation14_spill]] %s877_s24  ;;  %p146_p8 = scmp.eq.s32.totalorder %s555_s20, 2 }
  0x12   : > { %p603_p9 = scmp.lt.s32.totalorder %s810_s18, 3  ;;  %p885_p10 = por %p140_p7, %p58_p0 }
  0x13   : > { %p889_p11 = por %p146_p8, %p64_p3  ;;  %s894_s28 = sand.u32 1, %s806_s17  }
  0x14   : > { %p896_p12 = pnand %p603_p9, %p60_p5  ;;  %s188_s30 = sand.u32 1, %s810_s18  }
  0x15   : > { %s560_s5 = sshll.u32 %s894_s28, 4  ;;  %s579_s6 = sshll.u32 %s810_s18, 4 }
  0x16   : > { %s1047_s2 = sld [smem:[#allocation15_spill]]  ;;  %s192_s10 = scalar_lea.vmem [#allocation6], %s560_s5 }
  0x17   : > { %s201_s11 = sshll.u32 %s192_s10, 4  ;;  %p566_p13 = scmp.ge.s32.totalorder %s810_s18, 1  ;;  %s202_s11 = int_to_ptr.vmem [resolvable:$true] %s201_s11 }
  0x18   : > { %s907_s13 = scalar_lea.sflag [#allocation7], %s188_s30  ;;  %p654_p1 = pneg %p896_p12 }
  0x1c   : > { %s197_s9 = scalar_lea.hbm %s1047_s2, %s579_s6  ;;  %s657_s5 = scalar_lea.hbm %s1047_s2, 48 }
  0x1d   : > { %s199_s12 = sshll.u32 %s197_s9, 4  ;;  %s200_s12 = int_to_ptr.hbm [resolvable:$true] %s199_s12 }
  0x1e   : > { %s650_s14 = sshra.s32 %s200_s12, 4  ;;  %s651_s14 = int_to_ptr.hbm [resolvable:$true] %s650_s14 }
  0x1f   : > { %s652_s20 = scalar_lea.hbm %s651_s14, 16  ;;  %p658_p4 = scmp.lt.s32.totalorder %s651_s14, %s1047_s2 }
  0x20   : > { %p653_p0 = scmp.ne.s32.totalorder %s651_s14, %s652_s20  ;;  %p659_p5 = scmp.lt.s32.totalorder %s657_s5, %s652_s20 }
  0x22   : > { %p655_p2 = pnand %p654_p1, %p653_p0  ;;  %p660_p7 = por %p659_p5, %p658_p4 }
  0x24   : > { %p656_p3 = pneg %p655_p2 }
  0x26   : > { %p661_p8 = pnand %p660_p7, %p656_p3 }
  0x28   : > { %664 = shalt.err (!%p661_p8)
}
  0x29   : > { %595 = dma.hbm_to_vmem [thread:$0]  (!%p896_p12), %s200_s12, 256, %s202_s11, %s907_s13  }
  0x2a   : > { %p226_p9 = scmp.lt.s32.totalorder %s810_s18, 4  ;;  %s558_s30 = sshll.u32 %s894_s28, 3 }
  0x2b   : > { %s559_s8 = sshll.u32 %s810_s18, 3  ;;  %s173_s22 = scalar_lea.vmem [#allocation3], %s558_s30 }
  0x2c   : > { %p928_p0 = pnand %p566_p13, %p226_p9  ;;  %s177_s20 = scalar_lea.hbm %s1035_s1, %s559_s8 }
  0x2d   : > { %s181_s23 = sshll.u32 %s173_s22, 4  ;;  %s179_s5 = sshll.u32 %s177_s20, 4  ;;  %s182_s23 = int_to_ptr.vmem [resolvable:$true] %s181_s23  ;;  %s180_s5 = int_to_ptr.hbm [resolvable:$true] %s179_s5 }
  0x2e   : > { %s563_s6 = sshll.u32 %s894_s28, 2  ;;  %s170_s11 = scalar_lea.sflag [#allocation4], %s894_s28 }
  0x2f   : > { %s680_s12 = sshra.s32 %s180_s5, 4  ;;  %s687_s10 = scalar_lea.hbm %s1035_s1, 24  ;;  %s681_s12 = int_to_ptr.hbm [resolvable:$true] %s680_s12 }
  0x30   : > { %s682_s7 = scalar_lea.hbm %s681_s12, 8  ;;  %p688_p4 = scmp.lt.s32.totalorder %s681_s12, %s1035_s1 }
  0x31   : > { %p683_p2 = scmp.ne.s32.totalorder %s681_s12, %s682_s7  ;;  %p689_p5 = scmp.lt.s32.totalorder %s687_s10, %s682_s7 }
  0x33   : > { %p685_p13 = pnand %p683_p2, %p654_p1  ;;  %p690_p7 = por %p689_p5, %p688_p4 }
  0x35   : > { %p686_p3 = pneg %p685_p13 }
  0x37   : > { %p691_p8 = pnand %p690_p7, %p686_p3 }
  0x39   : > { %694 = shalt.err (!%p691_p8)
}
  0x3a   : > { %592 = dma.hbm_to_vmem [thread:$0]  (!%p896_p12), %s180_s5, 128, %s182_s23, %s170_s11  }
  0x3b   : > { %s580_s28 = sshll.u32 %s810_s18, 2  ;;  %s212_s2 = scalar_lea.vmem [#allocation8], %s563_s6 }
  0x3c   : > { %s217_s22 = scalar_lea.hbm %s1037_s3, %s580_s28  ;;  %s221_s24 = sshll.u32 %s212_s2, 4  ;;  %s222_s24 = int_to_ptr.vmem [resolvable:$true] %s221_s24 }
  0x3d   : > { %s219_s17 = sshll.u32 %s217_s22, 4  ;;  %s717_s5 = scalar_lea.hbm %s1037_s3, 12  ;;  %s220_s17 = int_to_ptr.hbm [resolvable:$true] %s219_s17 }
  0x3e   : > { %s710_s12 = sshra.s32 %s220_s17, 4  ;;  %s711_s12 = int_to_ptr.hbm [resolvable:$true] %s710_s12 }
  0x3f   : > { %s712_s7 = scalar_lea.hbm %s711_s12, 4  ;;  %p718_p3 = scmp.lt.s32.totalorder %s711_s12, %s1037_s3 }
  0x40   : > { %p713_p9 = scmp.ne.s32.totalorder %s711_s12, %s712_s7  ;;  %p719_p4 = scmp.lt.s32.totalorder %s717_s5, %s712_s7 }
  0x42   : > { %p715_p2 = pnand %p713_p9, %p654_p1  ;;  %p720_p5 = por %p719_p4, %p718_p3 }
  0x44   : > { %p716_p13 = pneg %p715_p2 }
  0x46   : > { %p721_p7 = pnand %p720_p5, %p716_p13 }
  0x48   : > { %724 = shalt.err (!%p721_p7)
}
  0x49   : > { %598 = dma.hbm_to_vmem [thread:$0]  (!%p896_p12), %s220_s17, 64, %s222_s24, %s907_s13  }
  0x4a   : > { %230 = sbr.rel (%p928_p0) target bundleno = 705 (0x2c1), region = 36  ;;  %s967_s6 = sand.u32 (!%p928_p0), 1, %s802_s16  }
  0x4b   : > { %s567_s30 = sshll.u32 (!%p928_p0), %s967_s6, 3  ;;  %s233_s28 = scalar_lea.sflag (!%p928_p0), [#allocation4], %s967_s6 }
  0x4c   : > { %s971_s14 = scalar_lea.vmem (!%p928_p0), [#allocation3], %s567_s30 }
  0x4f   : > { %785 = dma.done.wait (%p879_p6), %s233_s28, 128  }
  0x50   : > { %787 = vsyncadd (%p879_p6), %s233_s28, 4294967168  ;;  %s242_s17 = sand.u32 1, %s861_s19   ;;  %s568_s29 = sshll.u32 %s967_s6, 4 }
  0x51   : > { %s243_s13 = scalar_lea.sflag [#allocation7], %s242_s17  ;;  %s246_s9 = scalar_lea.vmem [#allocation6], %s568_s29 }
  0x52   : > { %789 = dma.done.wait (%p879_p6), %s243_s13, 320  }
  0x53   : > { %791 = vsyncadd (%p879_p6), %s243_s13, 4294966976  ;;  %s569_s20 = sshll.u32 %s967_s6, 2  ;;  %s986_s2 = scalar_lea.vmem [#allocation9], %s567_s30 }
  0x54   : > { %s984_s22 = scalar_lea.vmem [#allocation8], %s569_s20  ;;  %p571_p12 = scmp.ne.s32.totalorder %s861_s19, 0 }
  0x56   : > { %296 = sbr.rel (%p571_p12) target bundleno = 93 (0x5d), region = 52 }
  0x5b   : > { %v297_v0 = vld [vmem:[%s1034_s0] sm:$0xf]  ;;  %vm298_vm0 = vcmask 257024  }
  0x5c   : > { %299 = vst.msk [vmem:[#allocation2] sm:$0xf] %vm298_vm0, %v297_v0 }
  0x5d PF: > { %v301_v1 = vld [vmem:[%s246_s9] sm:$0xff]  ;;  %v312_v2 = vld [vmem:[%s246_s9 + $0x8] sm:$0xff]  ;;  %vm327_vm1 = vcmask 261120   ;;  %s812_s25 = smov 64   ;;  %s813_s7 = smov 96  }
  0x5e   : > { %v304_v3 = vunpack.c.2.s8 %v301_v1  ;;  %v305_v4 = vunpack.c.3.s8 %v301_v1  ;;  %v315_v5 = vunpack.c.2.s8 %v312_v2  ;;  %v316_v6 = vunpack.c.3.s8 %v312_v2  ;;  %v348_v23 = vld [vmem:[%s971_s14] sm:$0xff]  ;;  %v642_v26 = vld [vmem:[%s984_s22 + $0x2] ss:$0 sm:$0xff]  ;;  %v643_v27 = vld [vmem:[%s984_s22 + $0x3] ss:$0 sm:$0xff]  ;;  %s814_s10 = smov 32  }
  0x5f   : > { %v302_v7 = vunpack.c.0.s8 %v301_v1  ;;  %v303_v8 = vunpack.c.1.s8 %v301_v1  ;;  %v313_v9 = vunpack.c.0.s8 %v312_v2  ;;  %v314_v10 = vunpack.c.1.s8 %v312_v2  ;;  %v640_v34 = vld [vmem:[%s984_s22] ss:$0 sm:$0xff]  ;;  %v641_v36 = vld [vmem:[%s984_s22 + $0x1] ss:$0 sm:$0xff]  ;;  %s576_s23 = sshll.u32 %s861_s19, 3  ;;  %s439_s30 = sshll.u32 %s986_s2, 4  ;;  %s440_s30 = int_to_ptr.vmem [resolvable:$true] %s439_s30 }
  0x60   : > { %v308_v11 = vcvt.s32.f32 %v304_v3  ;;  %v309_v12 = vcvt.s32.f32 %v305_v4  ;;  %v319_v13 = vcvt.s32.f32 %v315_v5  ;;  %v320_v14 = vcvt.s32.f32 %v316_v6  ;;  %s437_s8 = scalar_lea.hbm %s1038_s4, %s576_s23  ;;  %s427_s14 = scalar_lea.sflag [#allocation5], %s967_s6 }
  0x61   : > { %v306_v15 = vcvt.s32.f32 %v302_v7  ;;  %v307_v16 = vcvt.s32.f32 %v303_v8  ;;  %v317_v17 = vcvt.s32.f32 %v313_v9  ;;  %v318_v18 = vcvt.s32.f32 %v314_v10  ;;  %s441_s28 = sshll.u32 %s437_s8, 4  ;;  %s760_s9 = scalar_lea.hbm %s1038_s4, 24  ;;  %s442_s28 = int_to_ptr.hbm [resolvable:$true] %s441_s28 }
  0x62   : > { %v311_v19 = vpack.c.bf16 %v309_v12, %v308_v11  ;;  %v322_v20 = vpack.c.bf16 %v320_v14, %v319_v13  ;;  %v349_v24 = vpack.c.bf16 %v348_v23, %v348_v23  ;;  %s754_s17 = sshra.s32 %s442_s28, 4  ;;  %s755_s17 = int_to_ptr.hbm [resolvable:$true] %s754_s17 }
  0x63   : > { %v310_v21 = vpack.c.bf16 %v307_v16, %v306_v15  ;;  %v321_v22 = vpack.c.bf16 %v318_v18, %v317_v17  ;;  %v300_v25 = vld [vmem:[#allocation2] sm:$0xf]  ;;  %s756_s29 = scalar_lea.hbm %s755_s17, 8  ;;  %p761_p8 = scmp.lt.s32.totalorder %s755_s17, %s1038_s4 }
  0x64   : > { %337 = vmatpush.bf16.msra.mxu0 %v311_v19  ;;  %359 = vmatpush.bf16.msra.mxu1 %v322_v20  ;;  %p757_p6 = scmp.ne.s32.totalorder %s755_s17, %s756_s29  ;;  %p762_p9 = scmp.lt.s32.totalorder %s760_s9, %s756_s29 }
  0x66   : > { %p758_p1 = pnand %p757_p6, %p885_p10  ;;  %p763_p2 = por %p762_p9, %p761_p8 }
  0x68   : > { %338 = vmatpush.bf16.msra.mxu0 %v310_v21  ;;  %360 = vmatpush.bf16.msra.mxu1 %v321_v22  ;;  %p759_p0 = pneg %p758_p1 }
  0x6a   : > { %p764_p13 = pnand %p763_p2, %p759_p0 }
  0x6b   : > { %572 = vmatmul.msk.bf16.vlgmr.msra.gmra.mxu0 %vm327_vm1, %v300_v25  ;;  %573 = vmatmul.msk.bf16.vlgmr.msra.gmra.mxu1 %vm327_vm1, %v349_v24 }
  0xe8   : > { %v340_v28 = vpop.f32.mrf.mxu0  ;;  %v362_v29 = vpop.f32.mrf.mxu1 }
  0xe9   : > { %v367_v30 = vmul.f32 %v642_v26, %v362_v29  ;;  %v345_v35 = vmul.f32 %v640_v34, %v340_v28 }
  0xeb   : > { %v369_v31 = vadd.f32 %v643_v27, %v367_v30  ;;  %v347_v37 = vadd.f32 %v641_v36, %v345_v35 }
  0xed   : > { %391 = vrot.lane.b32.xlu0 %v369_v31, %s812_s25  ;;  %v370_v38 = vadd.f32 %v369_v31, %v347_v37 }
  0xef   : > { %v574_v39 = vmul.f32 -1.442695, %v370_v38 }
  0xf0   : > { %v364_v32 = vpop.f32.mrf.mxu1  ;;  %v342_v33 = vpop.f32.mrf.mxu0 }
  0xf1   : > { %644 = vpow2.f32 %v574_v39 }
  0xf7   : > { %v645_v40 = vpop.eup %644 }
  0xf8   : > { %v374_v41 = vadd.f32 1.0, %v645_v40 }
  0xfa   : > { %646 = vrcp.f32 %v374_v41  ;;  %v386_v47 = vand.u32 2147483648, %v374_v41  ;;  %vm380_vm3 = vweird.f32 %v374_v41  ;;  %v384_v48 = vand.u32 2147483647, %v374_v41 }
  0xfc   : > { %v387_v50 = vor.u32 1.1754944e-38, %v386_v47  ;;  %vm385_vm5 = vcmp.eq.f32.partialorder %v384_v48, 8.507059e+37 }
 0x100   : > { %v647_v42 = vpop.eup %646 }
 0x101   : > { %v376_v43 = vmul.f32 %v647_v42, %v374_v41  ;;  %vm381_vm2 = vweird.f32 %v647_v42 }
 0x102   : > { %vm382_vm4 = vmor %vm380_vm3, %vm381_vm2 }
 0x103   : > { %v377_v44 = vsub.f32 1.0, %v376_v43 }
 0x105   : > { %v378_v45 = vmul.f32 %v647_v42, %v377_v44 }
 0x107   : > { %v379_v46 = vadd.f32 %v647_v42, %v378_v45 }
 0x109   : > { %v383_v49 = vsel %vm382_vm4, %v647_v42, %v379_v46 }
 0x10a   : > { %v388_v52 = vsel %vm385_vm5, %v387_v50, %v383_v49 }
 0x10b   : > { %v401_v58 = vsub.f32 1.0, %v388_v52 }
 0x15f   : > { %v392_v51 = vpop.permute.xlu0 %391 }
 0x160   : > { %v394_v53 = vmul.f32 %v392_v51, %v388_v52 }
 0x162   : > { %396 = vrot.lane.b32.xlu0 %v394_v53, %s812_s25 }
 0x1d4   : > { %v397_v54 = vpop.permute.xlu0 %396 }
 0x1d5   : > { %v399_v55 = vadd.f32 %v397_v54, %v347_v37 }
 0x1d7   : > { %648 = vtanh.f32 %v399_v55 }
 0x1dd   : > { %v649_v56 = vpop.eup %648 }
 0x1de   : > { %403 = vrot.lane.b32.xlu1 %v649_v56, %s813_s7 }
 0x1e6   : > { %408 = vrot.lane.b32.xlu1 %v348_v23, %s814_s10 }
 0x250   : > { %v404_v57 = vpop.permute.xlu1 %403 }
 0x251   : > { %v406_v60 = vmul.f32 %v404_v57, %v401_v58 }
 0x258   : > { %v409_v59 = vpop.permute.xlu1 %408 }
 0x259   : > { %v411_v61 = vmul.f32 %v409_v59, %v388_v52 }
 0x25b   : > { %v412_v62 = vadd.f32 %v411_v61, %v406_v60 }
 0x25d   : > { %414 = vrot.lane.b32.xlu2 %v412_v62, %s813_s7  ;;  %v419_v63 = vpack.c.bf16 %v412_v62, %v412_v62 }
 0x265   : > { %421 = vrot.lane.b32.xlu2 %v419_v63, %s813_s7 }
 0x2b7   : > { %v415_v0 = vpop.permute.xlu2 %414 }
 0x2b8   : > { %v417_v1 = vsel %vm327_vm1, %v415_v0, 0.0 }
 0x2b9   : > { %418 = vst [vmem:[%s986_s2] sm:$0xff] %v417_v1 }
 0x2ba   : > { %767 = shalt.err (!%p764_p13)
}
 0x2bb   : > { %587 = dma.vmem_to_hbm [thread:$0]  (%p885_p10), %s440_s30, 128, %s442_s28, %s427_s14   ;;  %vm424_vm6 = vcmask 257024  }
 0x2bf   : > { %v422_v2 = vpop.permute.xlu2 %421 }
 0x2c0   : > { %425 = vst.msk [vmem:[#allocation2] sm:$0xf] %vm424_vm6, %v422_v2 }
 0x2c1 PF: > { %p604_p3 = scmp.ge.s32.totalorder %s810_s18, 2  ;;  %s453_s6 = sand.u32 1, %s798_s15  }
 0x2c2   : > { %s454_s2 = scalar_lea.sflag [#allocation5], %s453_s6 }
 0x2c3   : > { %p600_p4 = pnand %p604_p3, %p889_p11 }
 0x2c5   : > { %p601_p5 = pneg %p600_p4 }
 0x2c7   : > { %793 = dma.done.wait (%p601_p5), %s454_s2, 128  }
 0x2c8   : > { %795 = vsyncadd (%p601_p5), %s454_s2, 4294967168  ;;  %s1049_s24 = sld [smem:[#allocation13_spill]]  ;;  %p20_p10 = scmp.ge.s32.totalorder %s865_s21, 5  }
 0x2c9   : > { %s1050_s17 = sld [smem:[#allocation14_spill]]  ;;  %s1051_s15 = smov %s802_s16 }
 0x2ca   : > { %s1053_s18 = smov %s865_s21  ;;  %22 = sbr.rel (!%p20_p10) target bundleno = 9 (0x9), region = 109 }
 0x2ce   : > { %s1052_s16 = smov %s1049_s24 }
 0x2cf   :  { %460 = vsyncpa [#allocation4], 1 }
 0x2d0   :  { %462 = vsyncpa [#allocation4 + $0x1], 1 }
 0x2d1   :  { %463 = vsyncpa [#allocation7], 1 }
 0x2d2   :  { %465 = vsyncpa [#allocation7 + $0x1], 1 }
 0x2d3   :  { %466 = vsyncpa [#allocation5], 1 }
 0x2d4   :  { %468 = vsyncpa [#allocation5 + $0x1], 1 }

</bundles_post_ra>
